<compile_context>
chip_gen: v5e
topology: v5e:2x2
jax: 0.10.0
libtpu: 0.0.40
codegen_flags: <defaults>
</compile_context>

<pallas_src>
import functools
import math

import jax
import jax.numpy as jnp
from jax.experimental import pallas as pl
from jax.experimental.pallas import tpu as pltpu


def _policy_kernel(min_val, action_dim,
                   x_ref, w1_ref, b1_ref, w2_ref, b2_ref, wh_ref, bh_ref,
                   out_ref):
    """Fused 3-matmul MLP forward on one [TB, *] batch tile."""
    cdt = w1_ref.dtype                      # compute dtype for the MXU (f32 or bf16)

    x = x_ref[...]
    h1 = jnp.dot(x, w1_ref[...], preferred_element_type=jnp.float32) + b1_ref[...]
    h1 = jnp.maximum(h1, 0.0)                                    # ReLU (f32)

    h2 = jnp.dot(h1.astype(cdt), w2_ref[...],
                 preferred_element_type=jnp.float32) + b2_ref[...]
    h2 = jnp.maximum(h2, 0.0)                                    # ReLU (f32)

    # Fused heads: single [TB, 2A] matmul.  mu in lanes 0:A, std in lanes A:2A.
    head = jnp.dot(h2.astype(cdt), wh_ref[...],
                   preferred_element_type=jnp.float32) + bh_ref[...]

    lane = jax.lax.broadcasted_iota(jnp.int32, head.shape, dimension=1)
    mu = jnp.tanh(head)                                          # lanes < A
    # softplus(z) = log(1 + exp(z)), computed stably as logaddexp(z, 0)
    std = jnp.logaddexp(head, 0.0) + min_val                     # lanes >= A
    out_ref[...] = jnp.where(lane < action_dim, mu, std).astype(out_ref.dtype)


def prepare_params(params, scale, compute_dtype=jnp.float32):
    """Fold 1/scale into W1 and fuse the mu/std heads into one [H, 2A] weight.

    params: dict with w1 [S,H], b1 [1,H], w2 [H,H], b2 [1,H],
                      wmu [H,A], bmu [1,A], wstd [H,A], bstd [1,A]
    compute_dtype: dtype fed to the MXU (f32 exact, or bf16 for speed / VMEM);
                   accumulation, biases and outputs always stay f32.
    """
    H, A = params["wmu"].shape

    wh = jnp.concatenate([params["wmu"], params["wstd"]], axis=1)   # [H, 2A]
    bh = jnp.concatenate([params["bmu"], params["bstd"]], axis=1)   # [1, 2A]

    return dict(
        w1=(params["w1"] / scale).astype(compute_dtype),
        b1=params["b1"].astype(jnp.float32),
        w2=params["w2"].astype(compute_dtype),
        b2=params["b2"].astype(jnp.float32),
        wh=wh.astype(compute_dtype),
        bh=bh.astype(jnp.float32),
        action_dim=A,
        compute_dtype=compute_dtype,
    )


def _choose_batch_tile(B, max_batch_tile):
    """Batch tile: big enough to amortize per-step overhead, >=2 blocks for v7x."""
    if B <= 128:
        # Small batch: single block, round rows up to 16 sublanes (covers bf16 tiles).
        return ((max(B, 8) + 15) // 16) * 16
    # Large batch: multiple of 128 rows (dense MXU M dim / dense output rows),
    # capped at ceil(B/2) so the grid has at least 2 blocks (v7x: 2 TensorCores).
    half = -(-B // 2)
    tb = max(128, min(max_batch_tile, ((half + 127) // 128) * 128))
    # Prefer a nearby tile that divides B exactly: avoids the wrapper-side pad copy.
    for cand in range(tb, tb // 2, -128):
        if B % cand == 0:
            return cand
    return tb


def _vmem_estimate_bytes(TB, S, H, HW, w_itemsize):
    """Double-buffered pipelined blocks + double-buffered resident weights/biases."""
    pipelined = 2 * TB * (S * w_itemsize + HW * 4)                 # x blocks + out blocks
    resident = 2 * ((S * H + H * H + H * HW) * w_itemsize + (2 * H + HW) * 4)
    return pipelined + resident


def policy_network_forward(x, prep, min_val=1e-8, max_batch_tile=4096):
    """Run the fused PolicyNetwork forward pass with one pallas_call.

    x:    [B, state_dim] float32
    prep: output of prepare_params
    returns (mu [B, A], std [B, A]) in float32
    """
    B, S = x.shape
    A = prep["action_dim"]
    HW = 2 * A
    H = prep["w2"].shape[0]
    w_itemsize = jnp.dtype(prep["compute_dtype"]).itemsize

    TB = _choose_batch_tile(B, max_batch_tile)
    # v7x VMEM re-budget (64 MiB physical / 32 MiB scoped default): shrink the
    # batch tile if the double-buffered footprint would not fit comfortably.
    vmem_budget = 24 << 20
    while TB > 128 and _vmem_estimate_bytes(TB, S, H, HW, w_itemsize) > vmem_budget:
        TB -= 128
    est = _vmem_estimate_bytes(TB, S, H, HW, w_itemsize)
    vmem_limit = int(min(max(2 * est, 32 << 20), 64 << 20))

    n_blocks = pl.cdiv(B, TB)
    B_pad = n_blocks * TB

    if x.dtype != prep["compute_dtype"]:
        x = x.astype(prep["compute_dtype"])
    if B_pad != B:
        x = jnp.pad(x, ((0, B_pad - B), (0, 0)))

    kernel = functools.partial(_policy_kernel, min_val, A)

    # Weights / biases: same block every grid step -> stay VMEM-resident.
    def resident(arr):
        return pl.BlockSpec(arr.shape, lambda i: (0, 0))

    out = pl.pallas_call(
        kernel,
        out_shape=jax.ShapeDtypeStruct((B_pad, HW), jnp.float32),
        grid=(n_blocks,),
        in_specs=[
            pl.BlockSpec((TB, S), lambda i: (i, 0)),   # x: blocked on batch
            resident(prep["w1"]), resident(prep["b1"]),
            resident(prep["w2"]), resident(prep["b2"]),
            resident(prep["wh"]), resident(prep["bh"]),
        ],
        out_specs=pl.BlockSpec((TB, HW), lambda i: (i, 0)),
        compiler_params=pltpu.CompilerParams(
            dimension_semantics=("parallel",),
            vmem_limit_bytes=vmem_limit),
    )(x, prep["w1"], prep["b1"], prep["w2"], prep["b2"], prep["wh"], prep["bh"])

    mu = out[:B, :A]
    std = out[:B, A:HW]
    return mu, std


def init_params(key, state_dim, action_dim, hidden_dim):
    """Deterministic init mirroring the PyTorch module.

    Weights: uniform(-1/sqrt(fan_in), 1/sqrt(fan_in))  (hidden_init).
    Biases:  PyTorch Linear default uniform(-1/sqrt(fan_in), 1/sqrt(fan_in)).
    Stored pre-transposed as [in, out]; biases as [1, out].
    """
    def linear(key, fan_in, fan_out):
        kw, kb = jax.random.split(key)
        lim = 1.0 / math.sqrt(fan_in)
        w = jax.random.uniform(kw, (fan_in, fan_out), jnp.float32, -lim, lim)
        b = jax.random.uniform(kb, (1, fan_out), jnp.float32, -lim, lim)
        return w, b

    k1, k2, k3, k4 = jax.random.split(key, 4)
    w1, b1 = linear(k1, state_dim, hidden_dim)
    w2, b2 = linear(k2, hidden_dim, hidden_dim)
    wmu, bmu = linear(k3, hidden_dim, action_dim)
    wstd, bstd = linear(k4, hidden_dim, action_dim)
    return dict(w1=w1, b1=b1, w2=w2, b2=b2,
                wmu=wmu, bmu=bmu, wstd=wstd, bstd=bstd)


if __name__ == "__main__":
    state_dim, action_dim, hidden_dim = 8, 4, 32
    scale = 2.0

    key = jax.random.PRNGKey(0)
    kx, kp, kx2 = jax.random.split(key, 3)
    params = init_params(kp, state_dim, action_dim, hidden_dim)

    def reference(xin):
        xs = xin / scale
        h1 = jnp.maximum(xs @ params["w1"] + params["b1"], 0.0)
        h2 = jnp.maximum(h1 @ params["w2"] + params["b2"], 0.0)
        mu_r = jnp.tanh(h2 @ params["wmu"] + params["bmu"])
        std_r = jax.nn.softplus(h2 @ params["wstd"] + params["bstd"]) + 1e-8
        return mu_r, std_r

    # --- Small batch, exact f32 compute path -------------------------------
    batch = 4
    x_small = jax.random.normal(kx, (batch, state_dim), jnp.float32)
    prep_f32 = prepare_params(params, scale)            # done once, outside hot path
    mu, std = policy_network_forward(x_small, prep_f32)
    jax.block_until_ready((mu, std))

    mu_ref, std_ref = reference(x_small)
    assert mu.shape == (batch, action_dim) and std.shape == (batch, action_dim)
    assert jnp.allclose(mu, mu_ref, atol=1e-5), "mu mismatch (f32, small batch)"
    assert jnp.allclose(std, std_ref, atol=1e-5), "std mismatch (f32, small batch)"

    # --- Larger batch: exercises multi-block grid (>=2 blocks) + pad path ---
    big_batch = 192
    x_big = jax.random.normal(kx2, (big_batch, state_dim), jnp.float32)
    mu2, std2 = policy_network_forward(x_big, prep_f32)
    jax.block_until_ready((mu2, std2))
    mu2_ref, std2_ref = reference(x_big)
    assert jnp.allclose(mu2, mu2_ref, atol=1e-5), "mu mismatch (f32, big batch)"
    assert jnp.allclose(std2, std2_ref, atol=1e-5), "std mismatch (f32, big batch)"

    # --- Optional bf16-MXU path (perf option from review); looser tolerance -
    prep_bf16 = prepare_params(params, scale, compute_dtype=jnp.bfloat16)
    mu3, std3 = policy_network_forward(x_big, prep_bf16)
    jax.block_until_ready((mu3, std3))
    assert jnp.allclose(mu3, mu2_ref, atol=5e-2, rtol=5e-2), "mu mismatch (bf16)"
    assert jnp.allclose(std3, std2_ref, atol=5e-2, rtol=5e-2), "std mismatch (bf16)"

    print("KERNEL_OK")
</pallas_src>

<mosaic_0001>
module attributes {stable_mosaic.version = 11 : i64} {
  func.func @_policy_kernel(%arg0: i32, %arg1: memref<16x8xf32, #tpu.memory_space<vmem>>, %arg2: memref<8x32xf32, #tpu.memory_space<vmem>>, %arg3: memref<1x32xf32, #tpu.memory_space<vmem>>, %arg4: memref<32x32xf32, #tpu.memory_space<vmem>>, %arg5: memref<1x32xf32, #tpu.memory_space<vmem>>, %arg6: memref<32x8xf32, #tpu.memory_space<vmem>>, %arg7: memref<1x8xf32, #tpu.memory_space<vmem>>, %arg8: memref<16x8xf32, #tpu.memory_space<vmem>>) attributes {dimension_semantics = [#tpu.dimension_semantics<parallel>], iteration_bounds = array<i64: 1>, scalar_prefetch = 0 : i64, scratch_operands = 0 : i64, tpu.core_type = #tpu.core_type<tc>, window_params = [{transform_indices = @transform_0, window_bounds = array<i64: 16, 8>}, {pipeline_mode = #tpu.pipeline_mode<synchronous>, transform_indices = @transform_1, window_bounds = array<i64: 8, 32>}, {pipeline_mode = #tpu.pipeline_mode<synchronous>, transform_indices = @transform_2, window_bounds = array<i64: 1, 32>}, {pipeline_mode = #tpu.pipeline_mode<synchronous>, transform_indices = @transform_3, window_bounds = array<i64: 32, 32>}, {pipeline_mode = #tpu.pipeline_mode<synchronous>, transform_indices = @transform_4, window_bounds = array<i64: 1, 32>}, {pipeline_mode = #tpu.pipeline_mode<synchronous>, transform_indices = @transform_5, window_bounds = array<i64: 32, 8>}, {pipeline_mode = #tpu.pipeline_mode<synchronous>, transform_indices = @transform_6, window_bounds = array<i64: 1, 8>}, {transform_indices = @transform_7, window_bounds = array<i64: 16, 8>}]} {
    %c0 = arith.constant 0 : index
    %c0_0 = arith.constant 0 : index
    %0 = vector.load %arg1[%c0, %c0_0] : memref<16x8xf32, #tpu.memory_space<vmem>>, vector<16x8xf32>
    %c0_1 = arith.constant 0 : index
    %c0_2 = arith.constant 0 : index
    %1 = vector.load %arg2[%c0_1, %c0_2] : memref<8x32xf32, #tpu.memory_space<vmem>>, vector<8x32xf32>
    %cst = arith.constant dense<0.000000e+00> : vector<16x32xf32>
    %2 = tpu.matmul %0, %1, %cst {dimension_numbers = #tpu.dot_dimension_numbers<[1], [0], [0], [1], [0, 0, 1, 1], [], []>} : vector<16x8xf32>, vector<8x32xf32>, vector<16x32xf32> -> vector<16x32xf32>
    %c0_3 = arith.constant 0 : index
    %c0_4 = arith.constant 0 : index
    %3 = vector.load %arg3[%c0_3, %c0_4] : memref<1x32xf32, #tpu.memory_space<vmem>>, vector<1x32xf32>
    %4 = vector.broadcast %3 : vector<1x32xf32> to vector<16x32xf32>
    %5 = arith.addf %2, %4 : vector<16x32xf32>
    %cst_5 = arith.constant 0.000000e+00 : f32
    %6 = vector.broadcast %cst_5 : f32 to vector<16x32xf32>
    %7 = arith.maximumf %5, %6 : vector<16x32xf32>
    %c0_6 = arith.constant 0 : index
    %c0_7 = arith.constant 0 : index
    %8 = vector.load %arg4[%c0_6, %c0_7] : memref<32x32xf32, #tpu.memory_space<vmem>>, vector<32x32xf32>
    %cst_8 = arith.constant dense<0.000000e+00> : vector<16x32xf32>
    %9 = tpu.matmul %7, %8, %cst_8 {dimension_numbers = #tpu.dot_dimension_numbers<[1], [0], [0], [1], [0, 0, 1, 1], [], []>} : vector<16x32xf32>, vector<32x32xf32>, vector<16x32xf32> -> vector<16x32xf32>
    %c0_9 = arith.constant 0 : index
    %c0_10 = arith.constant 0 : index
    %10 = vector.load %arg5[%c0_9, %c0_10] : memref<1x32xf32, #tpu.memory_space<vmem>>, vector<1x32xf32>
    %11 = vector.broadcast %10 : vector<1x32xf32> to vector<16x32xf32>
    %12 = arith.addf %9, %11 : vector<16x32xf32>
    %cst_11 = arith.constant 0.000000e+00 : f32
    %13 = vector.broadcast %cst_11 : f32 to vector<16x32xf32>
    %14 = arith.maximumf %12, %13 : vector<16x32xf32>
    %c0_12 = arith.constant 0 : index
    %c0_13 = arith.constant 0 : index
    %15 = vector.load %arg6[%c0_12, %c0_13] : memref<32x8xf32, #tpu.memory_space<vmem>>, vector<32x8xf32>
    %cst_14 = arith.constant dense<0.000000e+00> : vector<16x8xf32>
    %16 = tpu.matmul %14, %15, %cst_14 {dimension_numbers = #tpu.dot_dimension_numbers<[1], [0], [0], [1], [0, 0, 1, 1], [], []>} : vector<16x32xf32>, vector<32x8xf32>, vector<16x8xf32> -> vector<16x8xf32>
    %c0_15 = arith.constant 0 : index
    %c0_16 = arith.constant 0 : index
    %17 = vector.load %arg7[%c0_15, %c0_16] : memref<1x8xf32, #tpu.memory_space<vmem>>, vector<1x8xf32>
    %18 = vector.broadcast %17 : vector<1x8xf32> to vector<16x8xf32>
    %19 = arith.addf %16, %18 : vector<16x8xf32>
    %20 = tpu.iota {dimensions = array<i32: 1>} : vector<16x8xi32>
    %21 = math.tanh %19 : vector<16x8xf32>
    %cst_17 = arith.constant 0.000000e+00 : f32
    %22 = vector.broadcast %cst_17 : f32 to vector<16x8xf32>
    %23 = arith.maximumf %19, %22 : vector<16x8xf32>
    %24 = vector.broadcast %cst_17 : f32 to vector<16x8xf32>
    %25 = arith.subf %19, %24 : vector<16x8xf32>
    %26 = arith.cmpf one, %25, %25 : vector<16x8xf32>
    %27 = vector.broadcast %cst_17 : f32 to vector<16x8xf32>
    %28 = arith.addf %19, %27 : vector<16x8xf32>
    %29 = math.absf %25 : vector<16x8xf32>
    %cst_18 = arith.constant 0.000000e+00 : f32
    %30 = vector.broadcast %cst_18 : f32 to vector<16x8xf32>
    %31 = arith.subf %30, %29 : vector<16x8xf32>
    %32 = math.exp %31 : vector<16x8xf32>
    %33 = math.log1p %32 : vector<16x8xf32>
    %34 = arith.addf %23, %33 : vector<16x8xf32>
    %35 = arith.select %26, %28, %34 : vector<16x8xi1>, vector<16x8xf32>
    %cst_19 = arith.constant 9.99999993E-9 : f32
    %36 = vector.broadcast %cst_19 : f32 to vector<16x8xf32>
    %37 = arith.addf %35, %36 : vector<16x8xf32>
    %c4_i32 = arith.constant 4 : i32
    %38 = vector.broadcast %c4_i32 : i32 to vector<16x8xi32>
    %39 = arith.cmpi slt, %20, %38 : vector<16x8xi32>
    %40 = arith.select %39, %21, %37 : vector<16x8xi1>, vector<16x8xf32>
    %c0_20 = arith.constant 0 : index
    %c0_21 = arith.constant 0 : index
    %41 = vector.load %arg8[%c0_20, %c0_21] : memref<16x8xf32, #tpu.memory_space<vmem>>, vector<16x8xf32>
    tpu.vector_store %arg8[%c0_20, %c0_21], %40 {strides = array<i32>} : memref<16x8xf32, #tpu.memory_space<vmem>>, vector<16x8xf32>,
    return
  }
  func.func @transform_0(%arg0: i32) -> (i32, i32) {
    %c0_i32 = arith.constant 0 : i32
    %c0_i32_0 = arith.constant 0 : i32
    return %arg0, %c0_i32 : i32, i32
  }
  func.func @transform_1(%arg0: i32) -> (i32, i32) {
    %c0_i32 = arith.constant 0 : i32
    %c0_i32_0 = arith.constant 0 : i32
    %c0_i32_1 = arith.constant 0 : i32
    return %c0_i32, %c0_i32_0 : i32, i32
  }
  func.func @transform_2(%arg0: i32) -> (i32, i32) {
    %c0_i32 = arith.constant 0 : i32
    %c0_i32_0 = arith.constant 0 : i32
    %c0_i32_1 = arith.constant 0 : i32
    return %c0_i32, %c0_i32_0 : i32, i32
  }
  func.func @transform_3(%arg0: i32) -> (i32, i32) {
    %c0_i32 = arith.constant 0 : i32
    %c0_i32_0 = arith.constant 0 : i32
    %c0_i32_1 = arith.constant 0 : i32
    return %c0_i32, %c0_i32_0 : i32, i32
  }
  func.func @transform_4(%arg0: i32) -> (i32, i32) {
    %c0_i32 = arith.constant 0 : i32
    %c0_i32_0 = arith.constant 0 : i32
    %c0_i32_1 = arith.constant 0 : i32
    return %c0_i32, %c0_i32_0 : i32, i32
  }
  func.func @transform_5(%arg0: i32) -> (i32, i32) {
    %c0_i32 = arith.constant 0 : i32
    %c0_i32_0 = arith.constant 0 : i32
    %c0_i32_1 = arith.constant 0 : i32
    return %c0_i32, %c0_i32_0 : i32, i32
  }
  func.func @transform_6(%arg0: i32) -> (i32, i32) {
    %c0_i32 = arith.constant 0 : i32
    %c0_i32_0 = arith.constant 0 : i32
    %c0_i32_1 = arith.constant 0 : i32
    return %c0_i32, %c0_i32_0 : i32, i32
  }
  func.func @transform_7(%arg0: i32) -> (i32, i32) {
    %c0_i32 = arith.constant 0 : i32
    %c0_i32_0 = arith.constant 0 : i32
    return %arg0, %c0_i32 : i32, i32
  }
}

</mosaic_0001>

<bundles_post_ra>
// kernel: tpu_custom_call.1
= control target key start
LH: loop header
LB: loop body
LE: loop exit
PB: predicated region body
PF: predicated region fallthrough
CT: control target
= control target key end

     0   :  { %vm33_vm0 = vcmask 64512   ;;  %vm73_vm1 = vcmask 261120   ;;  %v142_v40 = vlaneseq  ;;  %s316_s1 = inlined_call_operand.vmem [shape: f32[8,32], index: 1, kind: input, shape index: {}]   ;;  %s317_s0 = inlined_call_operand.vmem [shape: f32[16,8], index: 0, kind: input, shape index: {}]   ;;  %s318_s3 = inlined_call_operand.vmem [shape: f32[32,32], index: 3, kind: input, shape index: {}]   ;;  %s319_s2 = inlined_call_operand.vmem [shape: f32[1,32], index: 2, kind: input, shape index: {}]   ;;  %s320_s4 = inlined_call_operand.vmem [shape: f32[1,32], index: 4, kind: input, shape index: {}]   ;;  %s321_s5 = inlined_call_operand.vmem [shape: f32[32,8], index: 5, kind: input, shape index: {}]   ;;  %s322_s6 = inlined_call_operand.vmem [shape: f32[1,8], index: 6, kind: input, shape index: {}]   ;;  %s323_s7 = inlined_call_operand.vmem [shape: f32[16,8], index: 7, kind: output, shape index: {}]  }
   0x1   :  { %v28_v0 = vld [vmem:[%s316_s1] sm:$0xff]  ;;  %v68_v2 = vld [vmem:[%s318_s3 + $0x18] sm:$0xff]  ;;  %v27_v3 = vld [vmem:[%s317_s0 + $0x8] sm:$0xff] }
   0x2   :  { %v26_v1 = vld [vmem:[%s317_s0] sm:$0xff]  ;;  %55 = vmatpush.msra.mxu0 %v28_v0  ;;  %92 = vmatpush.msra.mxu1 %v68_v2  ;;  %v67_v4 = vld [vmem:[%s318_s3 + $0x10] sm:$0xff]  ;;  %v66_v5 = vld [vmem:[%s318_s3 + $0x8] sm:$0xff]  ;;  %v143_v45 = vand.u32 127, %v142_v40 }
   0x3   :  { %193 = vmatmul.msk.f32.vlgmr.msra.gmra.mxu0 %vm33_vm0, %v26_v1  ;;  %199 = vmatpush.msra.mxu3 %v68_v2  ;;  %v65_v6 = vld [vmem:[%s318_s3] sm:$0xff]  ;;  %v108_v7 = vld [vmem:[%s321_s5 + $0x18] sm:$0xff]  ;;  %v107_v15 = vld [vmem:[%s321_s5 + $0x10] sm:$0xff] }
   0x4   :  { %93 = vmatpush.msra.mxu1 %v67_v4  ;;  %131 = vmatpush.msra.mxu2 %v108_v7  ;;  %v203_v8 = vld [vmem:[%s319_s2] ss:$0 sm:$0xff]  ;;  %v106_v16 = vld [vmem:[%s321_s5 + $0x8] sm:$0xff]  ;;  %vm184_vm4 = vcmp.lt.s32.totalorder %v143_v45, 4 }
   0x5   :  { %200 = vmatpush.msra.mxu3 %v67_v4  ;;  %v105_v17 = vld [vmem:[%s321_s5] sm:$0xff] }
   0x6   :  { %94 = vmatpush.msra.mxu1 %v66_v5  ;;  %132 = vmatpush.msra.mxu2 %v107_v15  ;;  %v204_v18 = vld [vmem:[%s320_s4] ss:$0 sm:$0xff] }
   0x7   :  { %201 = vmatpush.msra.mxu3 %v66_v5  ;;  %v205_v25 = vld [vmem:[%s322_s6] ss:$0 sm:$0xff] }
   0x8   :  { %95 = vmatpush.msra.mxu1 %v65_v6  ;;  %133 = vmatpush.msra.mxu2 %v106_v16 }
   0x9   :  { %202 = vmatpush.msra.mxu3 %v65_v6 }
   0xa   :  { %134 = vmatpush.msra.mxu2 %v105_v17 }
   0xb   :  { %194 = vmatmul.msk.f32.gmra.mxu0 %vm33_vm0, %v27_v3 }
  0x80   :  { %v57_v9 = vpop.f32.mrf.mxu0 }
  0x81   :  { %v58_v10 = vadd.f32 %v203_v8, %v57_v9 }
  0x83   :  { %v63_v11 = vmax.f32 %v58_v10, 0.0 }
  0x85   :  { %195 = vmatmul.msk.f32.vlgmr.msra.gmra.mxu1 %vm73_vm1, %v63_v11 }
  0x88   :  { %v60_v12 = vpop.f32.mrf.mxu0 }
  0x89   :  { %v61_v13 = vadd.f32 %v203_v8, %v60_v12 }
  0x8b   :  { %v64_v14 = vmax.f32 %v61_v13, 0.0 }
  0x8d   :  { %196 = vmatmul.msk.f32.vlgmr.msra.gmra.mxu3 %vm73_vm1, %v64_v14 }
 0x102   :  { %v97_v19 = vpop.f32.mrf.mxu1 }
 0x103   :  { %v98_v20 = vadd.f32 %v204_v18, %v97_v19 }
 0x105   :  { %v103_v21 = vmax.f32 %v98_v20, 0.0 }
 0x107   :  { %197 = vmatmul.msk.f32.vlgmr.msra.gmra.mxu2 %vm73_vm1, %v103_v21 }
 0x110   :  { %v100_v22 = vpop.f32.mrf.mxu3 }
 0x111   :  { %v101_v23 = vadd.f32 %v204_v18, %v100_v22 }
 0x113   :  { %v104_v24 = vmax.f32 %v101_v23, 0.0 }
 0x115   :  { %198 = vmatmul.msk.f32.gmra.mxu2 %vm73_vm1, %v104_v24 }
 0x18a   :  { %v136_v26 = vpop.f32.mrf.mxu2 }
 0x18b   :  { %v137_v27 = vadd.f32 %v205_v25, %v136_v26 }
 0x18d   :  { %v152_v28 = vand.u32 2147483647, %v137_v27  ;;  %v146_v46 = vmax.f32 %v137_v27, 0.0  ;;  %vm148_vm3 = vcmp.ne.f32.partialorder %v137_v27, %v137_v27 }
 0x18f   :  { %v154_v29 = vsub.f32 0.0, %v152_v28 }
 0x191   :  { %v156_v30 = vmul.f32 1.442695, %v154_v29 }
 0x193   :  { %206 = vpow2.f32 %v156_v30 }
 0x198   :  { %v139_v31 = vpop.f32.mrf.mxu2 }
 0x199   :  { %v207_v32 = vpop.eup %206  ;;  %v140_v33 = vadd.f32 %v205_v25, %v139_v31 }
 0x19a   :  { %v160_v34 = vadd.f32 1.0, %v207_v32  ;;  %v163_v35 = vmul.f32 -0.5, %v207_v32  ;;  %v166_v41 = vand.u32 2147483647, %v207_v32 }
 0x19b   :  { %v153_v36 = vand.u32 2147483647, %v140_v33  ;;  %v147_v61 = vmax.f32 %v140_v33, 0.0  ;;  %vm149_vm6 = vcmp.ne.f32.partialorder %v140_v33, %v140_v33 }
 0x19c   :  { %208 = vlog2.f32 %v160_v34  ;;  %v164_v38 = vadd.f32 1.0, %v163_v35  ;;  %vm167_vm2 = vcmp.lt.f32.partialorder %v166_v41, 0.0004427343 }
 0x19d   :  { %v155_v37 = vsub.f32 0.0, %v153_v36 }
 0x19e   :  { %v165_v44 = vmul.f32 %v207_v32, %v164_v38 }
 0x19f   :  { %v158_v39 = vmul.f32 1.442695, %v155_v37 }
 0x1a1   :  { %210 = vpow2.f32 %v158_v39 }
 0x1a2   :  { %v209_v42 = vpop.eup %208  ;;  %212 = vtanh.f32 %v137_v27 }
 0x1a3   :  { %v162_v43 = vmul.f32 0.6931472, %v209_v42 }
 0x1a5   :  { %v168_v47 = vsel %vm167_vm2, %v165_v44, %v162_v43 }
 0x1a6   :  { %v178_v48 = vadd.f32 %v168_v47, %v146_v46 }
 0x1a7   :  { %v211_v49 = vpop.eup %210 }
 0x1a8   :  { %v180_v50 = vsel %vm148_vm3, %v137_v27, %v178_v48  ;;  %v169_v51 = vadd.f32 1.0, %v211_v49  ;;  %v172_v53 = vmul.f32 -0.5, %v211_v49  ;;  %v213_v54 = vpop.eup %212  ;;  %v175_v57 = vand.u32 2147483647, %v211_v49 }
 0x1a9   :  { %v182_v52 = vadd.f32 1e-08, %v180_v50 }
 0x1aa   :  { %214 = vlog2.f32 %v169_v51  ;;  %v173_v56 = vadd.f32 1.0, %v172_v53  ;;  %vm176_vm5 = vcmp.lt.f32.partialorder %v175_v57, 0.0004427343 }
 0x1ab   :  { %v185_v55 = vsel %vm184_vm4, %v213_v54, %v182_v52  ;;  %216 = vtanh.f32 %v140_v33 }
 0x1ac   :  { %187 = vst.msk [vmem:[%s323_s7] sm:$0xff] %vm33_vm0, %v185_v55  ;;  %v174_v60 = vmul.f32 %v211_v49, %v173_v56 }
 0x1b0   :  { %v215_v58 = vpop.eup %214 }
 0x1b1   :  { %v171_v59 = vmul.f32 0.6931472, %v215_v58  ;;  %v217_v2 = vpop.eup %216 }
 0x1b3   :  { %v177_v62 = vsel %vm176_vm5, %v174_v60, %v171_v59 }
 0x1b4   :  { %v179_v63 = vadd.f32 %v177_v62, %v147_v61 }
 0x1b6   :  { %v181_v0 = vsel %vm149_vm6, %v140_v33, %v179_v63 }
 0x1b7   :  { %v183_v1 = vadd.f32 1e-08, %v181_v0 }
 0x1b9   :  { %v186_v3 = vsel %vm184_vm4, %v217_v2, %v183_v1 }
 0x1ba   :  { %188 = vst.msk [vmem:[%s323_s7 + $0x8] sm:$0xff] %vm33_vm0, %v186_v3 }

</bundles_post_ra>
